<compile_context>
chip_gen: v5e
topology: v5e:2x2
jax: 0.10.0
libtpu: 0.0.40
codegen_flags: <defaults>
</compile_context>

<pallas_src>
import functools

import jax
import jax.numpy as jnp
from jax.experimental import pallas as pl
from jax.experimental.pallas import tpu as pltpu


# --------------------------------------------------------------------------
# Kernels
# --------------------------------------------------------------------------

def _arm_fused_kernel(x_ref, w_ref, b_ref, out_ref, *, inv_hw, last_arm):
    """Single-pass fused kernel: one (1, C, HW) block per batch image."""
    # Global average pool over the pixel (lane) axis -> (C, 1).
    pooled = jnp.sum(x_ref[0], axis=1, keepdims=True) * inv_hw          # (C, 1)

    # 1x1 conv + folded eval-BN + sigmoid -> per-channel gate.
    z = jnp.dot(w_ref[...], pooled,
                preferred_element_type=jnp.float32) + b_ref[...]        # (C, 1)
    weights = jax.nn.sigmoid(z)                                         # (C, 1)

    # last_arm fold: out = x*weights; w2 = mean(out) = weights*pooled;
    # final = w2*out = x * (weights^2 * pooled).  One combined scale.
    if last_arm:
        scale = weights * weights * pooled                              # (C, 1)
    else:
        scale = weights

    # Single lane-dense read-scale-write pass (no (C,HW) temporaries kept live).
    out_ref[0] = (x_ref[0] * scale).astype(out_ref.dtype)


def _arm_pool_kernel(x_ref, w_ref, b_ref, scale_ref, acc_ref, *, inv_hw, last_arm):
    """Tiled pass 1: accumulate the global pool, finalize gate scale at last tile."""
    t = pl.program_id(1)

    @pl.when(t == 0)
    def _():
        acc_ref[...] = jnp.zeros_like(acc_ref)

    acc_ref[...] += jnp.sum(x_ref[0], axis=1, keepdims=True)            # (C, 1)

    @pl.when(t == pl.num_programs(1) - 1)
    def _():
        pooled = acc_ref[...] * inv_hw
        z = jnp.dot(w_ref[...], pooled,
                    preferred_element_type=jnp.float32) + b_ref[...]
        weights = jax.nn.sigmoid(z)
        if last_arm:
            scale_ref[0] = weights * weights * pooled
        else:
            scale_ref[0] = weights


def _arm_gate_kernel(x_ref, scale_ref, out_ref):
    """Tiled pass 2: lane-dense gate apply on (1, C, T) tiles."""
    out_ref[0] = (x_ref[0] * scale_ref[0]).astype(out_ref.dtype)


# --------------------------------------------------------------------------
# Wrapper
# --------------------------------------------------------------------------

def _fold_params(params, C, eps):
    """Fold conv bias + eval-mode BN into the 1x1-conv weight/bias."""
    w = params["conv1_w"].reshape(C, C)                                 # (Cout, Cin)
    s = params["bn_gamma"] / jnp.sqrt(params["bn_var"] + eps)
    w_eff = (w * s[:, None]).astype(jnp.float32)                        # (C, C)
    b_eff = ((params["conv1_b"] - params["bn_mean"]) * s
             + params["bn_beta"]).reshape(C, 1).astype(jnp.float32)     # (C, 1)
    return w_eff, b_eff


# Conservative fused-path budget: double-buffered in+out full-image blocks must
# fit comfortably even on v7x (64 MiB physical VMEM, ~32-56 MiB usable).
_FUSED_VMEM_BUDGET = 28 * 1024 * 1024


def _choose_tile(HW, C, itemsize=4):
    """Return None for the fused path, or an HW tile size for the two-pass path."""
    fused_bytes = 4 * C * HW * itemsize + 2 * (C * C + 2 * C) * itemsize
    if fused_bytes <= _FUSED_VMEM_BUDGET:
        return None
    for t in (2048, 1024, 512, 256, 128):        # lane-dense tiles, prefer big
        if HW % t == 0:
            return t
    # TODO(synk): ragged HW that is both huge and not a multiple of 128 would
    # need a BoundedSlice / padded-tile scheme; fall back to the fused block.
    return None


def _vmem_limit(bytes_needed):
    return int(min(max(bytes_needed + (2 << 20), 16 << 20), 100 << 20))


def attention_refinement_forward(x, params, last_arm=False, eps=1e-5,
                                 force_tile=None):
    """x: NCHW float32. Returns NCHW float32 (eval-mode BatchNorm)."""
    N, C, H, W = x.shape
    HW = H * W
    x2 = x.reshape(N, C, HW)                     # free: contiguous NCHW bitcast
    w_eff, b_eff = _fold_params(params, C, eps)
    inv_hw = 1.0 / HW

    tile = force_tile if force_tile is not None else _choose_tile(HW, C)

    if tile is None:
        # ---------------- Fused single-pass path ----------------
        kernel = functools.partial(_arm_fused_kernel, inv_hw=inv_hw,
                                   last_arm=last_arm)
        fused_bytes = 4 * C * HW * 4 + 2 * (C * C + 2 * C) * 4
        cost = pl.CostEstimate(
            flops=int(N * (2 * C * C + 2 * C * HW)),
            transcendentals=int(N * C),
            bytes_accessed=int(2 * N * C * HW * 4 + C * C * 4 + C * 4),
        )
        out2 = pl.pallas_call(
            kernel,
            out_shape=jax.ShapeDtypeStruct((N, C, HW), jnp.float32),
            grid_spec=pltpu.PrefetchScalarGridSpec(
                num_scalar_prefetch=0,
                grid=(N,),
                in_specs=[
                    pl.BlockSpec((1, C, HW), lambda n: (n, 0, 0)),
                    pl.BlockSpec((C, C), lambda n: (0, 0)),
                    pl.BlockSpec((C, 1), lambda n: (0, 0)),
                ],
                out_specs=pl.BlockSpec((1, C, HW), lambda n: (n, 0, 0)),
            ),
            compiler_params=pltpu.CompilerParams(
                dimension_semantics=("parallel",),
                vmem_limit_bytes=_vmem_limit(fused_bytes),
            ),
            cost_estimate=cost,
        )(x2, w_eff, b_eff)
        return out2.reshape(N, C, H, W)

    # ---------------- Two-pass HW-tiled path ----------------
    n_tiles = HW // tile

    # Pass 1: global pool accumulation + gate-scale finalize -> (N, C, 1).
    pool_kernel = functools.partial(_arm_pool_kernel, inv_hw=inv_hw,
                                    last_arm=last_arm)
    pool_bytes = 2 * C * tile * 4 + 2 * (C * C + 3 * C) * 4
    pool_cost = pl.CostEstimate(
        flops=int(N * (C * HW + 2 * C * C)),
        transcendentals=int(N * C),
        bytes_accessed=int(N * C * HW * 4 + N * C * 4 + C * C * 4 + C * 4),
    )
    scale = pl.pallas_call(
        pool_kernel,
        out_shape=jax.ShapeDtypeStruct((N, C, 1), jnp.float32),
        grid_spec=pltpu.PrefetchScalarGridSpec(
            num_scalar_prefetch=0,
            grid=(N, n_tiles),
            in_specs=[
                pl.BlockSpec((1, C, tile), lambda n, t: (n, 0, t)),
                pl.BlockSpec((C, C), lambda n, t: (0, 0)),
                pl.BlockSpec((C, 1), lambda n, t: (0, 0)),
            ],
            out_specs=pl.BlockSpec((1, C, 1), lambda n, t: (n, 0, 0)),
            scratch_shapes=[pltpu.VMEM((C, 1), jnp.float32)],
        ),
        compiler_params=pltpu.CompilerParams(
            dimension_semantics=("parallel", "arbitrary"),
            vmem_limit_bytes=_vmem_limit(pool_bytes),
        ),
        cost_estimate=pool_cost,
    )(x2, w_eff, b_eff)

    # Pass 2: lane-dense gate apply, both grid axes parallel (megacore work).
    gate_bytes = 4 * C * tile * 4 + 2 * C * 4
    gate_cost = pl.CostEstimate(
        flops=int(N * C * HW),
        transcendentals=0,
        bytes_accessed=int(2 * N * C * HW * 4 + N * C * 4),
    )
    out2 = pl.pallas_call(
        _arm_gate_kernel,
        out_shape=jax.ShapeDtypeStruct((N, C, HW), jnp.float32),
        grid_spec=pltpu.PrefetchScalarGridSpec(
            num_scalar_prefetch=0,
            grid=(N, n_tiles),
            in_specs=[
                pl.BlockSpec((1, C, tile), lambda n, t: (n, 0, t)),
                pl.BlockSpec((1, C, 1), lambda n, t: (n, 0, 0)),
            ],
            out_specs=pl.BlockSpec((1, C, tile), lambda n, t: (n, 0, t)),
        ),
        compiler_params=pltpu.CompilerParams(
            dimension_semantics=("parallel", "parallel"),
            vmem_limit_bytes=_vmem_limit(gate_bytes),
        ),
        cost_estimate=gate_cost,
    )(x2, scale)

    return out2.reshape(N, C, H, W)


# --------------------------------------------------------------------------
# Pure-JAX reference (same eval-mode BN semantics) and test harness
# --------------------------------------------------------------------------

def attention_refinement_reference(x, params, last_arm=False, eps=1e-5):
    N, C, H, W = x.shape
    pooled = jnp.mean(x, axis=(2, 3), keepdims=True)                    # (N,C,1,1)
    w = params["conv1_w"].reshape(C, C)
    y = jnp.einsum("nchw,oc->nohw", pooled, w) \
        + params["conv1_b"][None, :, None, None]
    y = (y - params["bn_mean"][None, :, None, None]) \
        / jnp.sqrt(params["bn_var"][None, :, None, None] + eps) \
        * params["bn_gamma"][None, :, None, None] \
        + params["bn_beta"][None, :, None, None]
    weights = jax.nn.sigmoid(y)
    out = weights * x
    if last_arm:
        w2 = jnp.mean(out, axis=(2, 3), keepdims=True)
        out = w2 * out
    return out


def make_params(key, in_channels):
    ks = jax.random.split(key, 6)
    C = in_channels
    return {
        "conv1_w": 0.1 * jax.random.normal(ks[0], (C, C, 1, 1), jnp.float32),
        "conv1_b": 0.1 * jax.random.normal(ks[1], (C,), jnp.float32),
        "bn_gamma": 1.0 + 0.1 * jax.random.normal(ks[2], (C,), jnp.float32),
        "bn_beta": 0.1 * jax.random.normal(ks[3], (C,), jnp.float32),
        "bn_mean": 0.1 * jax.random.normal(ks[4], (C,), jnp.float32),
        "bn_var": 0.5 + jnp.abs(jax.random.normal(ks[5], (C,), jnp.float32)),
    }


if __name__ == "__main__":
    key = jax.random.PRNGKey(0)
    kx, kp = jax.random.split(key)

    N, C, H, W = 2, 32, 16, 16
    x = jax.random.normal(kx, (N, C, H, W), jnp.float32)                # NCHW
    params = make_params(kp, C)

    for last_arm in (False, True):
        ref = jax.block_until_ready(
            attention_refinement_reference(x, params, last_arm=last_arm))

        # Fused single-pass path (auto-selected at this shape).
        out = jax.block_until_ready(
            attention_refinement_forward(x, params, last_arm=last_arm))
        assert out.shape == (N, C, H, W)
        err = jnp.max(jnp.abs(out - ref))
        assert jnp.allclose(out, ref, rtol=1e-5, atol=1e-5), \
            f"fused last_arm={last_arm}: max abs err = {err}"

        # Force the HW-tiled two-pass path to exercise it as well.
        out_t = jax.block_until_ready(
            attention_refinement_forward(x, params, last_arm=last_arm,
                                         force_tile=128))
        err_t = jnp.max(jnp.abs(out_t - ref))
        assert jnp.allclose(out_t, ref, rtol=1e-5, atol=1e-5), \
            f"tiled last_arm={last_arm}: max abs err = {err_t}"

    print("KERNEL_OK")
</pallas_src>

<mosaic_0001>
module attributes {stable_mosaic.version = 11 : i64} {
  func.func @_arm_fused_kernel(%arg0: i32, %arg1: memref<1x32x256xf32, #tpu.memory_space<vmem>>, %arg2: memref<32x32xf32, #tpu.memory_space<vmem>>, %arg3: memref<32x1xf32, #tpu.memory_space<vmem>>, %arg4: memref<1x32x256xf32, #tpu.memory_space<vmem>>) attributes {dimension_semantics = [#tpu.dimension_semantics<parallel>], iteration_bounds = array<i64: 2>, scalar_prefetch = 0 : i64, scratch_operands = 0 : i64, tpu.core_type = #tpu.core_type<tc>, window_params = [{transform_indices = @transform_0, window_bounds = array<i64: 1, 32, 256>}, {pipeline_mode = #tpu.pipeline_mode<synchronous>, transform_indices = @transform_1, window_bounds = array<i64: 32, 32>}, {pipeline_mode = #tpu.pipeline_mode<synchronous>, transform_indices = @transform_2, window_bounds = array<i64: 32, 1>}, {transform_indices = @transform_3, window_bounds = array<i64: 1, 32, 256>}]} {
    %c0 = arith.constant 0 : index
    %c0_0 = arith.constant 0 : index
    %c0_1 = arith.constant 0 : index
    %0 = vector.load %arg1[%c0, %c0_0, %c0_1] : memref<1x32x256xf32, #tpu.memory_space<vmem>>, vector<1x32x256xf32>
    %1 = vector.shape_cast %0 : vector<1x32x256xf32> to vector<32x256xf32>
    %cst = arith.constant dense<0.000000e+00> : vector<32xf32>
    %2 = vector.multi_reduction <add>, %1, %cst [1] : vector<32x256xf32> to vector<32xf32>
    %3 = vector.shape_cast %2 : vector<32xf32> to vector<32x1xf32>
    %cst_2 = arith.constant 3.906250e-03 : f32
    %4 = vector.broadcast %cst_2 : f32 to vector<32x1xf32>
    %5 = arith.mulf %3, %4 : vector<32x1xf32>
    %c0_3 = arith.constant 0 : index
    %c0_4 = arith.constant 0 : index
    %6 = vector.load %arg2[%c0_3, %c0_4] : memref<32x32xf32, #tpu.memory_space<vmem>>, vector<32x32xf32>
    %cst_5 = arith.constant dense<0.000000e+00> : vector<32x1xf32>
    %7 = tpu.matmul %6, %5, %cst_5 {dimension_numbers = #tpu.dot_dimension_numbers<[1], [0], [0], [1], [0, 0, 1, 1], [], []>} : vector<32x32xf32>, vector<32x1xf32>, vector<32x1xf32> -> vector<32x1xf32>
    %c0_6 = arith.constant 0 : index
    %c0_7 = arith.constant 0 : index
    %8 = vector.load %arg3[%c0_6, %c0_7] : memref<32x1xf32, #tpu.memory_space<vmem>>, vector<32x1xf32>
    %9 = arith.addf %7, %8 : vector<32x1xf32>
    %10 = arith.negf %9 : vector<32x1xf32>
    %11 = math.exp %10 : vector<32x1xf32>
    %cst_8 = arith.constant 1.000000e+00 : f32
    %12 = vector.broadcast %cst_8 : f32 to vector<32x1xf32>
    %13 = arith.addf %12, %11 : vector<32x1xf32>
    %14 = arith.divf %12, %13 : vector<32x1xf32>
    %c0_9 = arith.constant 0 : index
    %c0_10 = arith.constant 0 : index
    %c0_11 = arith.constant 0 : index
    %15 = vector.load %arg1[%c0_9, %c0_10, %c0_11] : memref<1x32x256xf32, #tpu.memory_space<vmem>>, vector<1x32x256xf32>
    %16 = vector.shape_cast %15 : vector<1x32x256xf32> to vector<32x256xf32>
    %17 = vector.broadcast %14 : vector<32x1xf32> to vector<32x256xf32>
    %18 = arith.mulf %16, %17 : vector<32x256xf32>
    %c0_12 = arith.constant 0 : index
    %c0_13 = arith.constant 0 : index
    %c0_14 = arith.constant 0 : index
    %19 = vector.load %arg4[%c0_12, %c0_13, %c0_14] : memref<1x32x256xf32, #tpu.memory_space<vmem>>, vector<1x32x256xf32>
    %20 = vector.shape_cast %19 : vector<1x32x256xf32> to vector<32x256xf32>
    %21 = vector.shape_cast %18 : vector<32x256xf32> to vector<1x32x256xf32>
    tpu.vector_store %arg4[%c0_12, %c0_13, %c0_14], %21 {strides = array<i32>} : memref<1x32x256xf32, #tpu.memory_space<vmem>>, vector<1x32x256xf32>,
    return
  }
  func.func @transform_0(%arg0: i32) -> (i32, i32, i32) {
    %c0_i32 = arith.constant 0 : i32
    %c0_i32_0 = arith.constant 0 : i32
    %c0_i32_1 = arith.constant 0 : i32
    return %arg0, %c0_i32, %c0_i32_0 : i32, i32, i32
  }
  func.func @transform_1(%arg0: i32) -> (i32, i32) {
    %c0_i32 = arith.constant 0 : i32
    %c0_i32_0 = arith.constant 0 : i32
    %c0_i32_1 = arith.constant 0 : i32
    return %c0_i32, %c0_i32_0 : i32, i32
  }
  func.func @transform_2(%arg0: i32) -> (i32, i32) {
    %c0_i32 = arith.constant 0 : i32
    %c0_i32_0 = arith.constant 0 : i32
    %c0_i32_1 = arith.constant 0 : i32
    return %c0_i32, %c0_i32_0 : i32, i32
  }
  func.func @transform_3(%arg0: i32) -> (i32, i32, i32) {
    %c0_i32 = arith.constant 0 : i32
    %c0_i32_0 = arith.constant 0 : i32
    %c0_i32_1 = arith.constant 0 : i32
    return %arg0, %c0_i32, %c0_i32_0 : i32, i32, i32
  }
}

</mosaic_0001>

<bundles_post_ra>
// kernel: tpu_custom_call.1
= control target key start
LH: loop header
LB: loop body
LE: loop exit
PB: predicated region body
PF: predicated region fallthrough
CT: control target
= control target key end

     0   :  { %8 = vsyncpa [#allocation3], 0  ;;  %s901_s0 = inlined_call_operand.hbm [shape: f32[2,32,256], index: 0, kind: input, shape index: {}]   ;;  %s902_s1 = inlined_call_operand.vmem [shape: f32[32,32], index: 1, kind: input, shape index: {}]   ;;  %s903_s2 = inlined_call_operand.vmem [shape: f32[32,1], index: 2, kind: input, shape index: {}]   ;;  %s904_s3 = inlined_call_operand.hbm [shape: f32[2,32,256], index: 3, kind: output, shape index: {}]  }
   0x1   :  { %10 = vsyncpa [#allocation3 + $0x1], 0 }
   0x2   :  { %11 = vsyncpa [#allocation4], 0 }
   0x3   :  { %13 = vsyncpa [#allocation4 + $0x1], 0  ;;  %s695_s12 = smov 0   ;;  %s697_s13 = smov 0  }
   0x4   :  { %s699_s14 = smov 0   ;;  %s701_s15 = smov 0  }
   0x5 LB: > { %s716_s16 = sadd.s32 4294967295, %s668_s15   ;;  %s466_s17 = sadd.s32 4294967294, %s668_s15   ;;  %s668_s15 = sphi %s701_s15, %s920_s15   ;;  %s664_s14 = sphi %s699_s14, %s919_s14   ;;  %s660_s13 = sphi %s697_s13, %s918_s13   ;;  %s656_s12 = sphi %s695_s12, %s917_s12  }
   0x6   : > { %s720_s18 = sadd.s32 1, %s668_s15   ;;  %s26_s19 = sadd.s32 1, %s664_s14 }
   0x7   : > { %s23_s20 = ssub.s32 %s668_s15, %s720_s18  ;;  %p33_p0 = scmp.ne.s32.totalorder %s664_s14, %s660_s13 }
   0x8   : > { %p24_p1 = scmp.eq.s32.totalorder %s23_s20, 0  ;;  %p34_p2 = scmp.eq.s32.totalorder %s668_s15, 0 }
   0x9   : > { %p39_p3 = scmp.ne.s32.totalorder %s660_s13, %s656_s12  ;;  %p40_p4 = scmp.eq.s32.totalorder %s716_s16, 0 }
   0xa   : > { %s732_s21 = scalar_select %p24_p1, %s664_s14, %s26_s19  }
   0xb   : > { %p734_p5 = por %p34_p2, %p33_p0  ;;  %p738_p6 = por %p40_p4, %p39_p3 }
   0xc   : > { %p105_p7 = scmp.eq.s32.totalorder %s716_s16, 1  ;;  %p111_p8 = scmp.eq.s32.totalorder %s466_s17, 1 }
   0xd   : > { %p514_p10 = scmp.lt.s32.totalorder %s668_s15, 2  ;;  %s137_s26 = sand.u32 1, %s664_s14  }
   0xe   : > { %p745_p11 = por %p105_p7, %p33_p0  ;;  %p749_p12 = por %p111_p8, %p39_p3 }
   0xf   : > { %s488_s27 = sshll.u32 %s668_s15, 6  ;;  %s469_s28 = sshll.u32 %s137_s26, 6 }
  0x10   : > { %s146_s4 = scalar_lea.hbm %s901_s0, %s488_s27  ;;  %s141_s6 = scalar_lea.vmem [#allocation2], %s469_s28 }
  0x11   : > { %s147_s5 = sshll.u32 %s146_s4, 4  ;;  %s149_s7 = sshll.u32 %s141_s6, 4  ;;  %s148_s5 = int_to_ptr.hbm [resolvable:$true] %s147_s5  ;;  %s150_s7 = int_to_ptr.vmem [resolvable:$true] %s149_s7 }
  0x12   : > { %p760_p13 = pnand %p514_p10, %p734_p5  ;;  %p472_p0 = scmp.ge.s32.totalorder %s668_s15, 1 }
  0x13   : > { %p157_p1 = scmp.lt.s32.totalorder %s668_s15, 3  ;;  %s138_s9 = scalar_lea.sflag [#allocation3], %s137_s26 }
  0x14   : > { %s572_s10 = sshra.s32 %s148_s5, 4  ;;  %p576_p3 = pneg %p760_p13  ;;  %s573_s10 = int_to_ptr.hbm [resolvable:$true] %s572_s10 }
  0x15   : > { %s574_s11 = scalar_lea.hbm %s573_s10, 64  ;;  %s579_s20 = scalar_lea.hbm %s901_s0, 128 }
  0x16   : > { %p575_p2 = scmp.ne.s32.totalorder %s573_s10, %s574_s11  ;;  %p580_p5 = scmp.lt.s32.totalorder %s573_s10, %s901_s0 }
  0x17   : > { %p581_p8 = scmp.lt.s32.totalorder %s579_s20, %s574_s11 }
  0x18   : > { %p577_p4 = pnand %p576_p3, %p575_p2 }
  0x19   : > { %p582_p10 = por %p581_p8, %p580_p5 }
  0x1a   : > { %p578_p7 = pneg %p577_p4 }
  0x1c   : > { %p583_p9 = pnand %p582_p10, %p578_p7 }
  0x1e   : > { %586 = shalt.err (!%p583_p9)
}
  0x1f   : > { %s670_s26 = smov 256   ;;  %s671_s28 = smov 16  }
  0x20   : > { %509 = dma.hbm_to_vmem [thread:$0]  (!%p760_p13), %s148_s5, 1024, %s150_s7, %s138_s9, %s670_s26, %s670_s26, %s671_s28  }
  0x21   : > { %p158_p2 = pnand %p472_p0, %p157_p1 }
  0x22   : > { %s781_s29 = sand.u32 (!%p158_p2), 1, %s660_s13  }
  0x23   : > { %161 = sbr.rel (%p158_p2) target bundleno = 462 (0x1ce), region = 32  ;;  %s473_s30 = sshll.u32 (!%p158_p2), %s781_s29, 6 }
  0x24   : > { %s164_s4 = scalar_lea.sflag (!%p158_p2), [#allocation3], %s781_s29  ;;  %s167_s6 = scalar_lea.vmem (!%p158_p2), [#allocation2], %s473_s30 }
  0x28   : > { %647 = dma.done.wait (%p738_p6), %s164_s4, 1024  }
  0x29   : > { %649 = vsyncadd (%p738_p6), %s164_s4, 4294966272  ;;  %v791_v0 = vld [vmem:[%s167_s6 + $0x30] sm:$0xff]  ;;  %v793_v1 = vld [vmem:[%s167_s6 + $0x38] sm:$0xff]  ;;  %vm223_vm0 = vcmask 261120   ;;  %v672_v24 = vmov 0   ;;  %s190_s23 = scalar_lea.vmem [#allocation5], %s473_s30 }
  0x2a   : > { %v795_v2 = vld [vmem:[%s167_s6 + $0x10] sm:$0xff]  ;;  %v208_v3 = vadd.f32 %v793_v1, %v791_v0  ;;  %v799_v4 = vld [vmem:[%s167_s6 + $0x18] sm:$0xff]  ;;  %v803_v6 = vld [vmem:[%s167_s6 + $0x20] sm:$0xff]  ;;  %555 = vset.pattern.permute.xlu1 %v672_v24  ;;  %554 = vset.pattern.permute.xlu0 %v672_v24  ;;  %s489_s5 = sshll.u32 %s716_s16, 6  ;;  %s390_s10 = sshll.u32 %s190_s23, 4  ;;  %s391_s10 = int_to_ptr.vmem [resolvable:$true] %s390_s10 }
  0x2b   : > { %v202_v5 = vadd.f32 %v799_v4, %v795_v2  ;;  %v805_v7 = vld [vmem:[%s167_s6 + $0x28] sm:$0xff]  ;;  %v807_v8 = vld [vmem:[%s167_s6] sm:$0xff]  ;;  %v217_v20 = vld [vmem:[%s902_s1 + $0x10] sm:$0xff]  ;;  %553 = vset.pattern.permute.xlu2 %v672_v24  ;;  %s389_s9 = scalar_lea.hbm %s904_s3, %s489_s5  ;;  %s378_s16 = scalar_lea.sflag [#allocation4], %s781_s29 }
  0x2c   : > { %209 = vadd.xlane.f32.xlu0 %v208_v3  ;;  %v809_v9 = vld [vmem:[%s167_s6 + $0x8] sm:$0xff]  ;;  %v205_v10 = vadd.f32 %v805_v7, %v803_v6  ;;  %v218_v21 = vld [vmem:[%s902_s1 + $0x18] sm:$0xff]  ;;  %v215_v22 = vld [vmem:[%s902_s1] sm:$0xff]  ;;  %s392_s11 = sshll.u32 %s389_s9, 4  ;;  %s622_s22 = scalar_lea.hbm %s904_s3, 128  ;;  %s393_s11 = int_to_ptr.hbm [resolvable:$true] %s392_s11 }
  0x2d   : > { %203 = vadd.xlane.f32.xlu1 %v202_v5  ;;  %v199_v11 = vadd.f32 %v809_v9, %v807_v8  ;;  %v216_v23 = vld [vmem:[%s902_s1 + $0x8] sm:$0xff]  ;;  %v219_v25 = vld [vmem:[%s903_s2] sm:$0xff]  ;;  %v221_v31 = vld [vmem:[%s903_s2 + $0x10] sm:$0xff]  ;;  %s616_s30 = sshra.s32 %s393_s11, 4  ;;  %s617_s30 = int_to_ptr.hbm [resolvable:$true] %s616_s30 }
  0x2e   : > { %v220_v26 = vld [vmem:[%s903_s2 + $0x8] sm:$0xff]  ;;  %v222_v32 = vld [vmem:[%s903_s2 + $0x18] sm:$0xff]  ;;  %s618_s17 = scalar_lea.hbm %s617_s30, 64  ;;  %p623_p0 = scmp.lt.s32.totalorder %s617_s30, %s904_s3 }
  0x2f   : > { %p619_p6 = scmp.ne.s32.totalorder %s617_s30, %s618_s17  ;;  %p624_p1 = scmp.lt.s32.totalorder %s622_s22, %s618_s17 }
  0x31   : > { %p620_p9 = pnand %p619_p6, %p745_p11  ;;  %p625_p3 = por %p624_p1, %p623_p0 }
  0x33   : > { %p621_p13 = pneg %p620_p9 }
  0x34   : > { %206 = vadd.xlane.f32.xlu0 %v205_v10 }
  0x35   : > { %200 = vadd.xlane.f32.xlu1 %v199_v11  ;;  %p626_p4 = pnand %p625_p3, %p621_p13 }
  0x9f   : > { %v210_v12 = vpop.xlane.xlu0 %209 }
  0xa0   : > { %v214_v13 = vmul.f32 0.00390625, %v210_v12  ;;  %v204_v14 = vpop.xlane.xlu1 %203 }
  0xa1   : > { %v212_v18 = vmul.f32 0.00390625, %v204_v14 }
  0xa2   : > { %248 = vmatpush.msra.mxu0 %v214_v13  ;;  %490 = vmatpush.msra.mxu1 %v214_v13 }
  0xa3   : > { %491 = vmatpush.msra.mxu2 %v214_v13  ;;  %492 = vmatpush.msra.mxu3 %v214_v13 }
  0xa7   : > { %v207_v15 = vpop.xlane.xlu0 %206 }
  0xa8   : > { %v213_v16 = vmul.f32 0.00390625, %v207_v15  ;;  %v201_v17 = vpop.xlane.xlu1 %200 }
  0xa9   : > { %v211_v19 = vmul.f32 0.00390625, %v201_v17 }
  0xaa   : > { %249 = vmatpush.msra.mxu0 %v213_v16  ;;  %493 = vmatpush.msra.mxu1 %v213_v16 }
  0xab   : > { %494 = vmatpush.msra.mxu2 %v213_v16  ;;  %495 = vmatpush.msra.mxu3 %v213_v16 }
  0xac   : > { %250 = vmatpush.msra.mxu0 %v212_v18  ;;  %496 = vmatpush.msra.mxu1 %v212_v18 }
  0xad   : > { %497 = vmatpush.msra.mxu2 %v212_v18  ;;  %498 = vmatpush.msra.mxu3 %v212_v18 }
  0xae   : > { %251 = vmatpush.msra.mxu0 %v211_v19  ;;  %499 = vmatpush.msra.mxu1 %v211_v19 }
  0xaf   : > { %500 = vmatpush.msra.mxu2 %v211_v19  ;;  %501 = vmatpush.msra.mxu3 %v211_v19 }
  0xb0   : > { %477 = vmatmul.msk.f32.vlgmr.msra.gmra.mxu2 %vm223_vm0, %v217_v20  ;;  %478 = vmatmul.msk.f32.vlgmr.msra.gmra.mxu3 %vm223_vm0, %v218_v21 }
  0xb1   : > { %475 = vmatmul.msk.f32.vlgmr.msra.gmra.mxu0 %vm223_vm0, %v215_v22  ;;  %476 = vmatmul.msk.f32.vlgmr.msra.gmra.mxu1 %vm223_vm0, %v216_v23 }
 0x12e   : > { %v253_v27 = vpop.f32.mrf.mxu0  ;;  %v256_v28 = vpop.f32.mrf.mxu1 }
 0x12f   : > { %v254_v29 = vadd.f32 %v253_v27, %v219_v25  ;;  %v257_v30 = vadd.f32 %v256_v28, %v220_v26 }
 0x131   : > { %v479_v33 = vmul.f32 -1.442695, %v254_v29  ;;  %v480_v34 = vmul.f32 -1.442695, %v257_v30 }
 0x133   : > { %v259_v35 = vpop.f32.mrf.mxu2  ;;  %v262_v36 = vpop.f32.mrf.mxu3  ;;  %556 = vpow2.f32 %v479_v33 }
 0x134   : > { %v260_v37 = vadd.f32 %v259_v35, %v221_v31  ;;  %v263_v38 = vadd.f32 %v262_v36, %v222_v32  ;;  %558 = vpow2.f32 %v480_v34 }
 0x136   : > { %v481_v39 = vmul.f32 -1.442695, %v260_v37  ;;  %v482_v40 = vmul.f32 -1.442695, %v263_v38 }
 0x138   : > { %560 = vpow2.f32 %v481_v39 }
 0x139   : > { %v557_v41 = vpop.eup %556  ;;  %562 = vpow2.f32 %v482_v40 }
 0x13a   : > { %v559_v42 = vpop.eup %558  ;;  %v277_v43 = vadd.f32 1.0, %v557_v41 }
 0x13b   : > { %v278_v44 = vadd.f32 1.0, %v559_v42 }
 0x13c   : > { %564 = vrcp.f32 %v277_v43  ;;  %v292_v52 = vand.u32 2147483648, %v277_v43  ;;  %vm286_vm1 = vweird.f32 %v277_v43  ;;  %v290_v55 = vand.u32 2147483647, %v277_v43 }
 0x13d   : > { %566 = vrcp.f32 %v278_v44  ;;  %vm301_vm4 = vweird.f32 %v278_v44  ;;  %v305_v12 = vand.u32 2147483647, %v278_v44  ;;  %v307_v13 = vand.u32 2147483648, %v278_v44 }
 0x13e   : > { %v561_v45 = vpop.eup %560  ;;  %v293_v62 = vor.u32 1.1754944e-38, %v292_v52  ;;  %vm291_vm5 = vcmp.eq.f32.partialorder %v290_v55, 8.507059e+37 }
 0x13f   : > { %v563_v46 = vpop.eup %562  ;;  %v279_v47 = vadd.f32 1.0, %v561_v45  ;;  %vm850_vm11 = vcmp.eq.f32.partialorder %v305_v12, 8.507059e+37  ;;  %v308_v26 = vor.u32 1.1754944e-38, %v307_v13 }
 0x140   : > { %v280_v48 = vadd.f32 1.0, %v563_v46 }
 0x141   : > { %568 = vrcp.f32 %v279_v47  ;;  %v320_v11 = vand.u32 2147483647, %v279_v47  ;;  %v322_v15 = vand.u32 2147483648, %v279_v47  ;;  %vm316_vm10 = vweird.f32 %v279_v47 }
 0x142   : > { %v565_v49 = vpop.eup %564  ;;  %570 = vrcp.f32 %v280_v48  ;;  %v337_v18 = vand.u32 2147483648, %v280_v48  ;;  %v335_v23 = vand.u32 2147483647, %v280_v48  ;;  %vm331_vm12 = vweird.f32 %v280_v48 }
 0x143   : > { %v567_v50 = vpop.eup %566  ;;  %v282_v51 = vmul.f32 %v565_v49, %v277_v43  ;;  %vm287_vm2 = vweird.f32 %v565_v49  ;;  %v323_v28 = vor.u32 1.1754944e-38, %v322_v15  ;;  %vm321_vm15 = vcmp.eq.f32.partialorder %v320_v11, 8.507059e+37 }
 0x144   : > { %v297_v53 = vmul.f32 %v567_v50, %v278_v44  ;;  %vm839_vm3 = vmor %vm286_vm1, %vm287_vm2  ;;  %vm302_vm6 = vweird.f32 %v567_v50  ;;  %v338_v30 = vor.u32 1.1754944e-38, %v337_v18  ;;  %vm336_vm0 = vcmp.eq.f32.partialorder %v335_v23, 8.507059e+37 }
 0x145   : > { %v283_v54 = vsub.f32 1.0, %v282_v51  ;;  %vm846_vm8 = vmor %vm301_vm4, %vm302_vm6 }
 0x146   : > { %v298_v56 = vsub.f32 1.0, %v297_v53 }
 0x147   : > { %v569_v57 = vpop.eup %568  ;;  %v284_v58 = vmul.f32 %v565_v49, %v283_v54 }
 0x148   : > { %v571_v59 = vpop.eup %570  ;;  %v312_v60 = vmul.f32 %v569_v57, %v279_v47  ;;  %v299_v63 = vmul.f32 %v567_v50, %v298_v56  ;;  %vm317_vm7 = vweird.f32 %v569_v57 }
 0x149   : > { %v327_v3 = vmul.f32 %v571_v59, %v280_v48  ;;  %v285_v5 = vadd.f32 %v565_v49, %v284_v58  ;;  %vm332_vm9 = vweird.f32 %v571_v59  ;;  %vm318_vm13 = vmor %vm316_vm10, %vm317_vm7 }
 0x14a   : > { %v313_v10 = vsub.f32 1.0, %v312_v60  ;;  %v300_v17 = vadd.f32 %v567_v50, %v299_v63  ;;  %vm333_vm14 = vmor %vm331_vm12, %vm332_vm9 }
 0x14b   : > { %v328_v14 = vsub.f32 1.0, %v327_v3  ;;  %v289_v16 = vsel %vm839_vm3, %v565_v49, %v285_v5 }
 0x14c   : > { %v314_v19 = vmul.f32 %v569_v57, %v313_v10  ;;  %v294_v20 = vsel %vm291_vm5, %v293_v62, %v289_v16  ;;  %v304_v29 = vsel %vm846_vm8, %v567_v50, %v300_v17 }
 0x14d   : > { %v329_v22 = vmul.f32 %v571_v59, %v328_v14  ;;  %343 = vperm.xlu2 %553, %v294_v20   ;;  %v309_v35 = vsel %vm850_vm11, %v308_v26, %v304_v29 }
 0x14e   : > { %v315_v24 = vadd.f32 %v569_v57, %v314_v19 }
 0x14f   : > { %v330_v27 = vadd.f32 %v571_v59, %v329_v22 }
 0x150   : > { %v319_v31 = vsel %vm318_vm13, %v569_v57, %v315_v24 }
 0x151   : > { %v334_v32 = vsel %vm333_vm14, %v571_v59, %v330_v27  ;;  %v324_v33 = vsel %vm321_vm15, %v323_v28, %v319_v31 }
 0x152   : > { %v339_v34 = vsel %vm336_vm0, %v338_v30, %v334_v32  ;;  %353 = vperm.xlu0 %554, %v324_v33  }
 0x153   : > { %358 = vperm.xlu1 %555, %v339_v34  }
 0x155   : > { %348 = vperm.xlu2 %553, %v309_v35  }
 0x1a7   : > { %v344_v36 = vpop.permute.xlu2 %343 }
 0x1a8   : > { %v361_v37 = vmul.f32 %v344_v36, %v807_v8  ;;  %v362_v38 = vmul.f32 %v344_v36, %v809_v9 }
 0x1aa   : > { %369 = vst [vmem:[%s190_s23] sm:$0xff] %v361_v37 }
 0x1ab   : > { %370 = vst [vmem:[%s190_s23 + $0x8] sm:$0xff] %v362_v38 }
 0x1af   : > { %v349_v39 = vpop.permute.xlu2 %348 }
 0x1b0   : > { %v363_v40 = vmul.f32 %v349_v39, %v795_v2  ;;  %v364_v41 = vmul.f32 %v349_v39, %v799_v4 }
 0x1b2   : > { %371 = vst [vmem:[%s190_s23 + $0x10] sm:$0xff] %v363_v40 }
 0x1b3   : > { %372 = vst [vmem:[%s190_s23 + $0x18] sm:$0xff] %v364_v41 }
 0x1c4   : > { %v354_v8 = vpop.permute.xlu0 %353 }
 0x1c5   : > { %v359_v9 = vpop.permute.xlu1 %358  ;;  %v365_v42 = vmul.f32 %v354_v8, %v803_v6  ;;  %v366_v43 = vmul.f32 %v354_v8, %v805_v7 }
 0x1c6   : > { %v367_v2 = vmul.f32 %v359_v9, %v791_v0  ;;  %v368_v4 = vmul.f32 %v359_v9, %v793_v1 }
 0x1c7   : > { %373 = vst [vmem:[%s190_s23 + $0x20] sm:$0xff] %v365_v42 }
 0x1c8   : > { %375 = vst [vmem:[%s190_s23 + $0x30] sm:$0xff] %v367_v2 }
 0x1c9   : > { %376 = vst [vmem:[%s190_s23 + $0x38] sm:$0xff] %v368_v4 }
 0x1ca   : > { %374 = vst [vmem:[%s190_s23 + $0x28] sm:$0xff] %v366_v43 }
 0x1cb   : > { %629 = shalt.err (!%p626_p4)
}
 0x1cc   : > { %s673_s29 = smov 256   ;;  %s674_s28 = smov 16  }
 0x1cd   : > { %504 = dma.vmem_to_hbm [thread:$0]  (%p745_p11), %s391_s10, 1024, %s393_s11, %s378_s16, %s673_s29, %s673_s29, %s674_s28  }
 0x1ce PF: > { %s407_s4 = sand.u32 1, %s656_s12   ;;  %p916_p7 = scmp.ge.s32.totalorder %s668_s15, 2 }
 0x1cf   : > { %s408_s6 = scalar_lea.sflag [#allocation4], %s407_s4 }
 0x1d0   : > { %p511_p5 = pnand %p916_p7, %p749_p12 }
 0x1d2   : > { %p512_p8 = pneg %p511_p5 }
 0x1d4   : > { %651 = dma.done.wait (%p512_p8), %s408_s6, 1024  }
 0x1d5   : > { %653 = vsyncadd (%p512_p8), %s408_s6, 4294966272  ;;  %p16_p10 = scmp.ge.s32.totalorder %s720_s18, 4   ;;  %s917_s12 = smov %s660_s13 }
 0x1d6   : > { %s918_s13 = smov %s664_s14  ;;  %s919_s14 = smov %s732_s21 }
 0x1d7   : > { %s920_s15 = smov %s720_s18  ;;  %18 = sbr.rel (!%p16_p10) target bundleno = 5 (0x5), region = 77 }
 0x1dc   :  { %414 = vsyncpa [#allocation3], 1 }
 0x1dd   :  { %416 = vsyncpa [#allocation3 + $0x1], 1 }
 0x1de   :  { %417 = vsyncpa [#allocation4], 1 }
 0x1df   :  { %419 = vsyncpa [#allocation4 + $0x1], 1 }

</bundles_post_ra>
